<compile_context>
chip_gen: v7x
topology: tpu7x:2x2x1
jax: 0.10.0
libtpu: 0.0.40
codegen_flags: <defaults>
</compile_context>

<pallas_src>
import functools

import jax
import jax.numpy as jnp
from jax import lax
from jax.experimental import pallas as pl
from jax.experimental.pallas import tpu as pltpu


# ---------------------------------------------------------------------------
# Small-C path: direct dynamic lane gather (whole (C, N) slab resident in VMEM)
# ---------------------------------------------------------------------------
def _gather_take_kernel(perm_ref, x_ref, o_ref, *, num_out):
    """perm_ref: (TB, 1, N) int32;  x_ref: (TB, C, N);  o_ref: (TB, C, M)."""
    tb, c, n = x_ref.shape
    for t in range(tb):  # TB is small and static; per-batch work is tiny.
        x_blk = x_ref[t]                                       # (C, N)
        idx2d = jnp.broadcast_to(perm_ref[t], (c, n))          # (C, N) int32
        # Mosaic dynamic lane gather: indices have the same shape as the
        # source (full permutation); we keep the first M permuted columns.
        gathered = jnp.take_along_axis(
            x_blk, idx2d, axis=-1, mode="promise_in_bounds")   # (C, N)
        o_ref[t] = gathered[:, :num_out].astype(o_ref.dtype)   # (C, M)


def _random_gather_take(x, perm, num_out, *, batch_tile=None):
    B, C, N = x.shape
    itemsize = jnp.dtype(x.dtype).itemsize

    if batch_tile is None:
        # Pack several batches per grid step (amortizes ~0.35us/step) while
        # keeping the double-buffered x blocks well under the 16 MiB v5e
        # scoped-VMEM default (and far under v7x's 64 MiB physical VMEM).
        cap = max(1, (8 * 1024 * 1024) // max(1, 2 * C * N * itemsize))
        cap = min(cap, 8, B)
        batch_tile = 1
        for d in range(cap, 0, -1):
            if B % d == 0:
                batch_tile = d
                break
    tb = batch_tile

    kernel = functools.partial(_gather_take_kernel, num_out=num_out)
    cost = pl.CostEstimate(
        flops=0,
        transcendentals=0,
        bytes_accessed=B * C * N * itemsize + B * N * 4 + B * C * num_out * itemsize,
    )
    return pl.pallas_call(
        kernel,
        out_shape=jax.ShapeDtypeStruct((B, C, num_out), x.dtype),
        grid_spec=pltpu.PrefetchScalarGridSpec(
            num_scalar_prefetch=0,
            grid=(B // tb,),
            in_specs=[
                pl.BlockSpec((tb, 1, N), lambda b: (b, 0, 0)),   # permutation
                pl.BlockSpec((tb, C, N), lambda b: (b, 0, 0)),   # points
            ],
            out_specs=pl.BlockSpec((tb, C, num_out), lambda b: (b, 0, 0)),
        ),
        compiler_params=pltpu.CompilerParams(
            dimension_semantics=("parallel",),
        ),
        cost_estimate=cost,
    )(perm[:, None, :], x)


# ---------------------------------------------------------------------------
# Large-C path: lane-dense one-hot MXU matmul, tiled over M and N
# ---------------------------------------------------------------------------
def _gather_matmul_kernel(idx_ref, x_ref, o_ref, *, n_total, n_tile):
    """idx_ref: (1, 1, TM) int32;  x_ref: (1, C, TN);  o_ref: (1, C, TM)."""
    k = pl.program_id(2)
    last_k = pl.num_programs(2) - 1

    @pl.when(k == 0)
    def _init():
        o_ref[...] = jnp.zeros_like(o_ref)

    c = x_ref.shape[1]
    tn = x_ref.shape[2]
    tm = o_ref.shape[2]

    # onehot[n, j] = (n == idx[j] - k*TN).  Rows past the true N never match
    # (idx < N), so out-of-range columns simply select nothing.
    idx_local = idx_ref[0] - k * n_tile                            # (1, TM)
    lanes = lax.broadcasted_iota(jnp.int32, (tn, tm), 0)           # (TN, TM)
    onehot = (lanes == idx_local).astype(x_ref.dtype)              # (TN, TM)

    def accumulate(x_blk):
        # Selection matmul: every output element receives exactly one nonzero
        # contribution across all k tiles, so accumulating directly into the
        # resident output block is exact (no scratch accumulator needed).
        o_ref[0] += jnp.dot(
            x_blk, onehot, preferred_element_type=jnp.float32
        ).astype(o_ref.dtype)

    if n_total % n_tile != 0:
        # Only the last N tile can carry undefined padding (NaN/Inf guard);
        # gate the mask there so all other tiles skip the iota/compare/select.
        @pl.when(k == last_k)
        def _tail():
            xb = x_ref[0]
            col = k * n_tile + lax.broadcasted_iota(jnp.int32, (c, tn), 1)
            accumulate(jnp.where(col < n_total, xb, 0.0))

        @pl.when(k != last_k)
        def _body():
            accumulate(x_ref[0])
    else:
        accumulate(x_ref[0])


def _random_gather_matmul(x, idx, num_out, *, n_tile=None, m_tile=None):
    B, C, N = x.shape
    M = num_out
    itemsize = jnp.dtype(x.dtype).itemsize

    if n_tile is None:
        # Keep the (C, TN) x block around <= 2 MiB so double-buffered inputs
        # plus the (TN, TM) one-hot fit the 16 MiB v5e / 32 MiB v6e-v7x
        # scoped-VMEM budgets.
        n_tile = max(128, min(1024, (2 * 1024 * 1024) // max(1, C * itemsize)) // 128 * 128)
        n_tile = min(n_tile, N)
    if m_tile is None:
        m_tile = M
        for cand in (512, 256, 128):
            if M % cand == 0:
                m_tile = cand
                break

    kt = pl.cdiv(N, n_tile)
    mt = M // m_tile

    kernel = functools.partial(_gather_matmul_kernel, n_total=N, n_tile=n_tile)
    cost = pl.CostEstimate(
        flops=2 * B * C * N * M,
        transcendentals=0,
        bytes_accessed=B * C * N * itemsize + B * M * 4 + B * C * M * itemsize,
    )
    return pl.pallas_call(
        kernel,
        out_shape=jax.ShapeDtypeStruct((B, C, M), x.dtype),
        grid_spec=pltpu.PrefetchScalarGridSpec(
            num_scalar_prefetch=0,
            grid=(B, mt, kt),
            in_specs=[
                pl.BlockSpec((1, 1, m_tile), lambda b, m, k: (b, 0, m)),   # idx
                pl.BlockSpec((1, C, n_tile), lambda b, m, k: (b, 0, k)),   # x
            ],
            out_specs=pl.BlockSpec((1, C, m_tile), lambda b, m, k: (b, 0, m)),
        ),
        compiler_params=pltpu.CompilerParams(
            dimension_semantics=("parallel", "parallel", "arbitrary"),
            vmem_limit_bytes=32 * 1024 * 1024,
        ),
        cost_estimate=cost,
    )(idx[:, None, :], x)


# ---------------------------------------------------------------------------
# Wrapper matching RandomSampler.forward
# ---------------------------------------------------------------------------
def random_sampler(x, num_out_points, key, *, c_matmul_threshold=128):
    """x: (B, C, N) -> (y: (B, C, M), idx: (B, M) int32)."""
    B, C, N = x.shape
    M = num_out_points

    # Glue: per-batch random permutation (mirrors torch.randperm per batch).
    keys = jax.random.split(key, B)
    perm = jax.vmap(lambda k_: jax.random.permutation(k_, N))(keys).astype(jnp.int32)
    idx = perm[:, :M]                                              # (B, M)

    itemsize = jnp.dtype(x.dtype).itemsize
    slab_fits_vmem = C * N * itemsize <= 4 * 1024 * 1024
    if C < c_matmul_threshold and slab_fits_vmem:
        try:
            y = _random_gather_take(x, perm, M)
        except Exception:
            # Guard: if this jax/libtpu combination cannot lower the dynamic
            # lane gather, fall back to the always-supported one-hot matmul.
            y = _random_gather_matmul(x, idx, M)
    else:
        y = _random_gather_matmul(x, idx, M)
    return y, idx


if __name__ == "__main__":
    key = jax.random.PRNGKey(0)
    k_x, k_perm = jax.random.split(key)

    # Primary (module-sized) test: small C -> dynamic lane-gather path.
    B, C, N = 2, 4, 16
    M = 8
    x = jax.random.normal(k_x, (B, C, N), dtype=jnp.float32)
    y, idx = random_sampler(x, M, k_perm)
    y = jax.block_until_ready(y)
    y_ref = jnp.take_along_axis(x, idx[:, None, :].astype(jnp.int32), axis=2)
    assert y.shape == (B, C, M)
    assert jnp.allclose(y, y_ref), "gather path mismatch vs reference"
    assert jnp.all((idx >= 0) & (idx < N))

    # Secondary test: exercise the large-C one-hot matmul path with M and N
    # tiling and an overhanging last N tile (N % n_tile != 0).
    B2, C2, N2, M2 = 2, 8, 320, 256
    k_x2, k_perm2 = jax.random.split(k_perm)
    x2 = jax.random.normal(k_x2, (B2, C2, N2), dtype=jnp.float32)
    keys2 = jax.random.split(k_perm2, B2)
    idx2 = jax.vmap(lambda k_: jax.random.permutation(k_, N2)[:M2])(keys2).astype(jnp.int32)
    y2 = _random_gather_matmul(x2, idx2, M2, n_tile=128, m_tile=128)
    y2 = jax.block_until_ready(y2)
    y2_ref = jnp.take_along_axis(x2, idx2[:, None, :], axis=2)
    assert jnp.allclose(y2, y2_ref), "matmul path mismatch vs reference"

    print("KERNEL_OK")
</pallas_src>

<mosaic_0001>
module attributes {stable_mosaic.version = 11 : i64} {
  func.func @_gather_take_kernel(%arg0: i32, %arg1: memref<2x1x16xi32, #tpu.memory_space<vmem>>, %arg2: memref<2x4x16xf32, #tpu.memory_space<vmem>>, %arg3: memref<2x4x8xf32, #tpu.memory_space<vmem>>) attributes {dimension_semantics = [#tpu.dimension_semantics<parallel>], iteration_bounds = array<i64: 1>, scalar_prefetch = 0 : i64, scratch_operands = 0 : i64, tpu.core_type = #tpu.core_type<tc>, window_params = [{transform_indices = @transform_0, window_bounds = array<i64: 2, 1, 16>}, {transform_indices = @transform_1, window_bounds = array<i64: 2, 4, 16>}, {transform_indices = @transform_2, window_bounds = array<i64: 2, 4, 8>}]} {
    %c0 = arith.constant 0 : index
    %c0_0 = arith.constant 0 : index
    %c0_1 = arith.constant 0 : index
    %0 = vector.load %arg2[%c0, %c0_0, %c0_1] : memref<2x4x16xf32, #tpu.memory_space<vmem>>, vector<1x4x16xf32>
    %1 = vector.shape_cast %0 : vector<1x4x16xf32> to vector<4x16xf32>
    %c0_2 = arith.constant 0 : index
    %c0_3 = arith.constant 0 : index
    %c0_4 = arith.constant 0 : index
    %2 = vector.load %arg1[%c0_2, %c0_3, %c0_4] : memref<2x1x16xi32, #tpu.memory_space<vmem>>, vector<1x1x16xi32>
    %3 = vector.shape_cast %2 : vector<1x1x16xi32> to vector<1x16xi32>
    %4 = vector.shape_cast %3 : vector<1x16xi32> to vector<1x16xi32>
    %5 = vector.broadcast %4 : vector<1x16xi32> to vector<4x16xi32>
    %6 = vector.shape_cast %5 : vector<4x16xi32> to vector<4x16x1xi32>
    %7 = vector.shape_cast %6 : vector<4x16x1xi32> to vector<4x16xi32>
    %8 = tpu.dynamic_gather %1[%7] in [1] : vector<4x16xf32>, vector<4x16xi32> -> vector<4x16xf32>
    %9 = vector.extract_strided_slice %8 {offsets = [0, 0], sizes = [4, 8], strides = [1, 1]} : vector<4x16xf32> to vector<4x8xf32>
    %c0_5 = arith.constant 0 : index
    %c0_6 = arith.constant 0 : index
    %c0_7 = arith.constant 0 : index
    %10 = vector.load %arg3[%c0_5, %c0_6, %c0_7] : memref<2x4x8xf32, #tpu.memory_space<vmem>>, vector<1x4x8xf32>
    %11 = vector.shape_cast %10 : vector<1x4x8xf32> to vector<4x8xf32>
    %12 = vector.shape_cast %9 : vector<4x8xf32> to vector<1x4x8xf32>
    tpu.vector_store %arg3[%c0_5, %c0_6, %c0_7], %12 {strides = array<i32>} : memref<2x4x8xf32, #tpu.memory_space<vmem>>, vector<1x4x8xf32>,
    %c1 = arith.constant 1 : index
    %c0_8 = arith.constant 0 : index
    %c0_9 = arith.constant 0 : index
    %13 = vector.load %arg2[%c1, %c0_8, %c0_9] : memref<2x4x16xf32, #tpu.memory_space<vmem>>, vector<1x4x16xf32>
    %14 = vector.shape_cast %13 : vector<1x4x16xf32> to vector<4x16xf32>
    %c1_10 = arith.constant 1 : index
    %c0_11 = arith.constant 0 : index
    %c0_12 = arith.constant 0 : index
    %15 = vector.load %arg1[%c1_10, %c0_11, %c0_12] : memref<2x1x16xi32, #tpu.memory_space<vmem>>, vector<1x1x16xi32>
    %16 = vector.shape_cast %15 : vector<1x1x16xi32> to vector<1x16xi32>
    %17 = vector.shape_cast %16 : vector<1x16xi32> to vector<1x16xi32>
    %18 = vector.broadcast %17 : vector<1x16xi32> to vector<4x16xi32>
    %19 = vector.shape_cast %18 : vector<4x16xi32> to vector<4x16x1xi32>
    %20 = vector.shape_cast %19 : vector<4x16x1xi32> to vector<4x16xi32>
    %21 = tpu.dynamic_gather %14[%20] in [1] : vector<4x16xf32>, vector<4x16xi32> -> vector<4x16xf32>
    %22 = vector.extract_strided_slice %21 {offsets = [0, 0], sizes = [4, 8], strides = [1, 1]} : vector<4x16xf32> to vector<4x8xf32>
    %c1_13 = arith.constant 1 : index
    %c0_14 = arith.constant 0 : index
    %c0_15 = arith.constant 0 : index
    %23 = vector.load %arg3[%c1_13, %c0_14, %c0_15] : memref<2x4x8xf32, #tpu.memory_space<vmem>>, vector<1x4x8xf32>
    %24 = vector.shape_cast %23 : vector<1x4x8xf32> to vector<4x8xf32>
    %25 = vector.shape_cast %22 : vector<4x8xf32> to vector<1x4x8xf32>
    tpu.vector_store %arg3[%c1_13, %c0_14, %c0_15], %25 {strides = array<i32>} : memref<2x4x8xf32, #tpu.memory_space<vmem>>, vector<1x4x8xf32>,
    return
  }
  func.func @transform_0(%arg0: i32) -> (i32, i32, i32) {
    %c0_i32 = arith.constant 0 : i32
    %c0_i32_0 = arith.constant 0 : i32
    %c0_i32_1 = arith.constant 0 : i32
    return %arg0, %c0_i32, %c0_i32_0 : i32, i32, i32
  }
  func.func @transform_1(%arg0: i32) -> (i32, i32, i32) {
    %c0_i32 = arith.constant 0 : i32
    %c0_i32_0 = arith.constant 0 : i32
    %c0_i32_1 = arith.constant 0 : i32
    return %arg0, %c0_i32, %c0_i32_0 : i32, i32, i32
  }
  func.func @transform_2(%arg0: i32) -> (i32, i32, i32) {
    %c0_i32 = arith.constant 0 : i32
    %c0_i32_0 = arith.constant 0 : i32
    %c0_i32_1 = arith.constant 0 : i32
    return %arg0, %c0_i32, %c0_i32_0 : i32, i32, i32
  }
}

module attributes {stable_mosaic.version = 11 : i64} {
  func.func @_gather_matmul_kernel(%arg0: i32, %arg1: i32, %arg2: i32, %arg3: memref<1x1x8xi32, #tpu.memory_space<vmem>>, %arg4: memref<1x4x16xf32, #tpu.memory_space<vmem>>, %arg5: memref<1x4x8xf32, #tpu.memory_space<vmem>>) attributes {dimension_semantics = [#tpu.dimension_semantics<parallel>, #tpu.dimension_semantics<parallel>, #tpu.dimension_semantics<arbitrary>], iteration_bounds = array<i64: 2, 1, 1>, scalar_prefetch = 0 : i64, scratch_operands = 0 : i64, tpu.core_type = #tpu.core_type<tc>, window_params = [{transform_indices = @transform_0, window_bounds = array<i64: 1, 1, 8>}, {transform_indices = @transform_1, window_bounds = array<i64: 1, 4, 16>}, {transform_indices = @transform_2, window_bounds = array<i64: 1, 4, 8>}]} {
    %c0_i32 = arith.constant 0 : i32
    %0 = arith.cmpi eq, %arg2, %c0_i32 : i32
    %1 = arith.extui %0 : i1 to i32
    %c0_i32_0 = arith.constant 0 : i32
    %2 = arith.cmpi ne, %1, %c0_i32_0 : i32
    scf.if %2 {
      %cst_12 = arith.constant 0.000000e+00 : f32
      %22 = vector.broadcast %cst_12 : f32 to vector<1x4x8xf32>
      %c0_13 = arith.constant 0 : index
      %c0_14 = arith.constant 0 : index
      %c0_15 = arith.constant 0 : index
      %23 = vector.load %arg5[%c0_13, %c0_14, %c0_15] : memref<1x4x8xf32, #tpu.memory_space<vmem>>, vector<1x4x8xf32>
      tpu.vector_store %arg5[%c0_13, %c0_14, %c0_15], %22 {strides = array<i32>} : memref<1x4x8xf32, #tpu.memory_space<vmem>>, vector<1x4x8xf32>,
    } else {
    }
    %c0 = arith.constant 0 : index
    %c0_1 = arith.constant 0 : index
    %c0_2 = arith.constant 0 : index
    %3 = vector.load %arg3[%c0, %c0_1, %c0_2] : memref<1x1x8xi32, #tpu.memory_space<vmem>>, vector<1x1x8xi32>
    %4 = vector.shape_cast %3 : vector<1x1x8xi32> to vector<1x8xi32>
    %c16_i32 = arith.constant 16 : i32
    %5 = arith.muli %arg2, %c16_i32 : i32
    %6 = vector.broadcast %5 : i32 to vector<1x8xi32>
    %7 = arith.subi %4, %6 : vector<1x8xi32>
    %8 = tpu.iota {dimensions = array<i32: 0>} : vector<16x8xi32>
    %9 = vector.broadcast %7 : vector<1x8xi32> to vector<16x8xi32>
    %10 = arith.cmpi eq, %8, %9 : vector<16x8xi32>
    %11 = arith.extui %10 : vector<16x8xi1> to vector<16x8xi32>
    %12 = arith.sitofp %11 : vector<16x8xi32> to vector<16x8xf32>
    %c0_3 = arith.constant 0 : index
    %c0_4 = arith.constant 0 : index
    %c0_5 = arith.constant 0 : index
    %13 = vector.load %arg4[%c0_3, %c0_4, %c0_5] : memref<1x4x16xf32, #tpu.memory_space<vmem>>, vector<1x4x16xf32>
    %14 = vector.shape_cast %13 : vector<1x4x16xf32> to vector<4x16xf32>
    %c0_6 = arith.constant 0 : index
    %c0_7 = arith.constant 0 : index
    %c0_8 = arith.constant 0 : index
    %15 = vector.load %arg5[%c0_6, %c0_7, %c0_8] : memref<1x4x8xf32, #tpu.memory_space<vmem>>, vector<1x4x8xf32>
    %16 = vector.shape_cast %15 : vector<1x4x8xf32> to vector<4x8xf32>
    %cst = arith.constant dense<0.000000e+00> : vector<4x8xf32>
    %17 = tpu.matmul %14, %12, %cst {dimension_numbers = #tpu.dot_dimension_numbers<[1], [0], [0], [1], [0, 0, 1, 1], [], []>} : vector<4x16xf32>, vector<16x8xf32>, vector<4x8xf32> -> vector<4x8xf32>
    %18 = arith.addf %16, %17 : vector<4x8xf32>
    %c0_9 = arith.constant 0 : index
    %c0_10 = arith.constant 0 : index
    %c0_11 = arith.constant 0 : index
    %19 = vector.load %arg5[%c0_9, %c0_10, %c0_11] : memref<1x4x8xf32, #tpu.memory_space<vmem>>, vector<1x4x8xf32>
    %20 = vector.shape_cast %19 : vector<1x4x8xf32> to vector<4x8xf32>
    %21 = vector.shape_cast %18 : vector<4x8xf32> to vector<1x4x8xf32>
    tpu.vector_store %arg5[%c0_9, %c0_10, %c0_11], %21 {strides = array<i32>} : memref<1x4x8xf32, #tpu.memory_space<vmem>>, vector<1x4x8xf32>,
    return
  }
  func.func @transform_0(%arg0: i32, %arg1: i32, %arg2: i32) -> (i32, i32, i32) {
    %c0_i32 = arith.constant 0 : i32
    %c0_i32_0 = arith.constant 0 : i32
    return %arg0, %c0_i32, %arg1 : i32, i32, i32
  }
  func.func @transform_1(%arg0: i32, %arg1: i32, %arg2: i32) -> (i32, i32, i32) {
    %c0_i32 = arith.constant 0 : i32
    %c0_i32_0 = arith.constant 0 : i32
    return %arg0, %c0_i32, %arg2 : i32, i32, i32
  }
  func.func @transform_2(%arg0: i32, %arg1: i32, %arg2: i32) -> (i32, i32, i32) {
    %c0_i32 = arith.constant 0 : i32
    %c0_i32_0 = arith.constant 0 : i32
    return %arg0, %c0_i32, %arg1 : i32, i32, i32
  }
}

</mosaic_0001>

<bundles_post_ra>
// kernel: tpu_custom_call.1
= control target key start
LH: loop header
LB: loop body
LE: loop exit
PB: predicated region body
PF: predicated region fallthrough
CT: control target
= control target key end

     0   :  { %7 = vsyncpa [#allocation3], 0  ;;  %s229_s0 = inlined_call_operand.hbm [shape: s32[2,1,16], index: 0, kind: input, shape index: {}]   ;;  %s230_s1 = inlined_call_operand.hbm [shape: f32[2,4,16], index: 1, kind: input, shape index: {}]   ;;  %s231_s2 = inlined_call_operand.hbm [shape: f32[2,4,8], index: 2, kind: output, shape index: {}]  }
   0x1   :  { %8 = vsyncpa [#allocation6], 0 }
   0x2   :  { %9 = vsyncpa [#allocation4], 0  ;;  %s165_s9 = smov [#allocation2]   ;;  %s93_s13 = scalar_lea.hbm %s229_s0, 32 }
   0x3   :  { %s15_s10 = sshll.u32 %s165_s9, 4  ;;  %p94_p0 = scmp.ne.s32.totalorder %s229_s0, %s93_s13  ;;  %s16_s10 = int_to_ptr.vmem [resolvable:$true] %s15_s10 }
   0x4   :  { %p97_p1 = scmp.lt.u32.totalorder %s93_s13, %s229_s0 }
   0x6   :  { %p99_p2 = pnand %p97_p1, %p94_p0 }
   0x8   :  { %102 = shalt.err (!%p99_p2)
}
   0x9   :  { %s103_s18 = scalar_lea.vmem %s16_s10, 32  ;;  %p108_p4 = scmp.lt.s32.totalorder %s16_s10, %s16_s10 }
   0xa   :  { %p104_p3 = scmp.ne.s32.totalorder %s16_s10, %s103_s18  ;;  %p109_p5 = scmp.lt.s32.totalorder %s103_s18, %s103_s18 }
   0xc   :  { %p110_p6 = por %p109_p5, %p108_p4 }
   0xe   :  { %p111_p7 = pnand %p110_p6, %p104_p3 }
  0x10   :  { %114 = shalt.err (!%p111_p7)
}
  0x11   :  { %s166_s19 = smov 16   ;;  %s167_s20 = smov 1  }
  0x12   :  { %21 = dma.hbm_to_vmem [thread:$0]  %s229_s0, 32, %s16_s10, [#allocation3], %s166_s19, %s166_s19, %s167_s20  }
  0x13   :  { %s168_s23 = smov [#allocation5]   ;;  %s115_s27 = scalar_lea.hbm %s230_s1, 128 }
  0x14   :  { %s27_s24 = sshll.u32 %s168_s23, 4  ;;  %p116_p8 = scmp.ne.s32.totalorder %s230_s1, %s115_s27  ;;  %s28_s24 = int_to_ptr.vmem [resolvable:$true] %s27_s24 }
  0x15   :  { %p119_p9 = scmp.lt.u32.totalorder %s115_s27, %s230_s1 }
  0x17   :  { %p121_p10 = pnand %p119_p9, %p116_p8 }
  0x19   :  { %124 = shalt.err (!%p121_p10)
}
  0x1a   :  { %s125_s4 = scalar_lea.vmem %s28_s24, 128  ;;  %p130_p12 = scmp.lt.s32.totalorder %s28_s24, %s28_s24 }
  0x1b   :  { %p126_p11 = scmp.ne.s32.totalorder %s28_s24, %s125_s4  ;;  %p131_p13 = scmp.lt.s32.totalorder %s125_s4, %s125_s4 }
  0x1d   :  { %p132_p0 = por %p131_p13, %p130_p12 }
  0x1f   :  { %p133_p1 = pnand %p132_p0, %p126_p11 }
  0x21   :  { %136 = shalt.err (!%p133_p1)
}
  0x22   :  { %s169_s0 = smov 64   ;;  %s170_s5 = smov 4  }
  0x23   :  { %33 = dma.hbm_to_vmem [thread:$0]  %s230_s1, 128, %s28_s24, [#allocation6], %s169_s0, %s169_s0, %s170_s5  }
  0x24   :  { %159 = dma.done.wait [#allocation3], 32  }
  0x25   :  { %160 = vsyncadd [#allocation3], 4294967264 }
  0x26   :  { %161 = dma.done.wait [#allocation6], 128  }
  0x27   :  { %162 = vsyncadd [#allocation6], 4294967168  ;;  %v82_v0 = vld [vmem:[#allocation2] ss:$0 sm:$0xff]  ;;  %v40_v1 = vld [vmem:[#allocation5] sm:$0xf] }
  0x28   :  { %91 = vset.pattern.permute.xlu0 %v82_v0  ;;  %v83_v2 = vld [vmem:[#allocation2 + $0x1] ss:$0 sm:$0xff]  ;;  %v52_v3 = vld [vmem:[#allocation5 + $0x4] sm:$0xf]  ;;  %vm49_vm0 = vcmask 60416   ;;  %s171_s8 = smov [#allocation7]  }
  0x29   :  { %s69_s9 = sshll.u32 %s171_s8, 4  ;;  %s70_s9 = int_to_ptr.vmem [resolvable:$true] %s69_s9 }
  0x2a   :  { %s137_s1 = scalar_lea.vmem %s70_s9, 128  ;;  %p142_p3 = scmp.lt.s32.totalorder %s70_s9, %s70_s9 }
  0x2b   :  { %p138_p2 = scmp.ne.s32.totalorder %s70_s9, %s137_s1  ;;  %p143_p4 = scmp.lt.s32.totalorder %s137_s1, %s137_s1 }
  0x2c   :  { %47 = vperm.xlu0 %91, %v40_v1  }
  0x2d   :  { %p144_p5 = por %p143_p4, %p142_p3 }
  0x2f   :  { %p145_p6 = pnand %p144_p5, %p138_p2 }
  0x30   :  { %92 = vset.pattern.permute.xlu0 %v83_v2 }
  0x34   :  { %60 = vperm.xlu0 %92, %v52_v3  }
  0xab   :  { %v48_v4 = vpop.permute.xlu0 %47 }
  0xac   :  { %50 = vst.msk [vmem:[#allocation7] sm:$0xf] %vm49_vm0, %v48_v4 }
  0xb3   :  { %v61_v5 = vpop.permute.xlu0 %60 }
  0xb4   :  { %63 = vst.msk [vmem:[#allocation7 + $0x4] sm:$0xf] %vm49_vm0, %v61_v5 }
  0xb5   :  { %148 = shalt.err (!%p145_p6)
}
  0xb6   :  { %s149_s12 = scalar_lea.hbm %s231_s2, 128 }
  0xb7   :  { %p150_p7 = scmp.ne.s32.totalorder %s231_s2, %s149_s12  ;;  %p153_p8 = scmp.lt.u32.totalorder %s149_s12, %s231_s2 }
  0xb9   :  { %p155_p9 = pnand %p153_p8, %p150_p7 }
  0xbb   :  { %158 = shalt.err (!%p155_p9)
}
  0xbc   :  { %75 = dma.vmem_to_hbm [thread:$0]  %s70_s9, 128, %s231_s2, [#allocation4], %s169_s0, %s169_s0, %s170_s5  }
  0xbd   :  { %163 = dma.done.wait [#allocation4], 128  }
  0xbe   :  { %164 = vsyncadd [#allocation4], 4294967168 }
  0xbf   :  { %79 = vsyncpa [#allocation3], 1 }
  0xc0   :  { %80 = vsyncpa [#allocation6], 1 }
  0xc1   :  { %81 = vsyncpa [#allocation4], 1 }

// kernel: tpu_custom_call.1
= control target key start
LH: loop header
LB: loop body
LE: loop exit
PB: predicated region body
PF: predicated region fallthrough
CT: control target
= control target key end

     0   :  { %7 = vsyncpa [#allocation3], 0  ;;  %s934_s0 = inlined_call_operand.hbm [shape: s32[2,1,8], index: 0, kind: input, shape index: {}]   ;;  %s935_s1 = inlined_call_operand.hbm [shape: f32[2,4,16], index: 1, kind: input, shape index: {}]   ;;  %s936_s2 = inlined_call_operand.hbm [shape: f32[2,4,8], index: 2, kind: output, shape index: {}]  }
   0x1   :  { %9 = vsyncpa [#allocation3 + $0x1], 0 }
   0x2   :  { %10 = vsyncpa [#allocation6], 0 }
   0x3   :  { %12 = vsyncpa [#allocation6 + $0x1], 0 }
   0x4   :  { %13 = vsyncpa [#allocation4], 0 }
   0x5   :  { %15 = vsyncpa [#allocation4 + $0x1], 0  ;;  %s715_s9 = smov 0   ;;  %s717_s10 = smov 0  }
   0x6   :  { %s719_s11 = smov 0   ;;  %s721_s12 = smov 0  }
   0x7   :  { %s723_s13 = smov 0   ;;  %s725_s14 = smov 0  }
   0x8 LB: > { %s441_s15 = sadd.s32 4294967295, %s691_s14   ;;  %s442_s16 = sadd.s32 4294967294, %s691_s14   ;;  %s691_s14 = sphi %s725_s14, %s21_s14   ;;  %s687_s13 = sphi %s723_s13, %s956_s13   ;;  %s683_s12 = sphi %s721_s12, %s955_s12   ;;  %s679_s11 = sphi %s719_s11, %s954_s11   ;;  %s675_s10 = sphi %s717_s10, %s953_s10   ;;  %s671_s9 = sphi %s715_s9, %s952_s9  }
   0x9   : > { %s40_s17 = sadd.s32 1, %s687_s13  ;;  %s49_s18 = sadd.s32 1, %s679_s11 }
   0xa   : > { %p42_p0 = scmp.ge.s32.totalorder %s40_s17, 2  ;;  %p56_p1 = scmp.ne.s32.totalorder %s679_s11, %s675_s10 }
   0xb   : > { %p57_p2 = scmp.eq.s32.totalorder %s691_s14, 0  ;;  %p62_p3 = scmp.ne.s32.totalorder %s675_s10, %s671_s9 }
   0xc   : > { %s958_s17 = smov (%p42_p0, %s40_s17), 0  ;;  %p63_p5 = scmp.eq.s32.totalorder %s441_s15, 0 }
   0xd   : > { %p756_p4 = por %p57_p2, %p56_p1  ;;  %s44_s20 = ssub.s32 %s687_s13, %s958_s17 }
   0xe   : > { %p116_p6 = scmp.eq.s32.totalorder %s441_s15, 1  ;;  %p47_p7 = scmp.eq.s32.totalorder %s44_s20, 0 }
   0xf   : > { %p762_p8 = por %p63_p5, %p62_p3  ;;  %p122_p10 = scmp.eq.s32.totalorder %s442_s16, 1 }
  0x10   : > { %p766_p9 = por %p116_p6, %p56_p1  ;;  %p491_p13 = scmp.lt.s32.totalorder %s691_s14, 2 }
  0x11   : > { %s940_s21 = scalar_select %p762_p8, 1, 0 }
  0x12   : > { %s941_s22 = scalar_select %p766_p9, 1, 0 }
  0x13   : > { %s771_s23 = scalar_select %p47_p7, %s679_s11, %s49_s18  }
  0x14   : > { %p773_p11 = por %p122_p10, %p62_p3  ;;  %s780_s25 = sand.u32 1, %s679_s11  }
  0x15   : > { %s445_s26 = sshll.u32 %s687_s13, 4  ;;  %s145_s27 = scalar_lea.vmem [#allocation2], %s780_s25 }
  0x16   : > { %s942_s24 = scalar_select %p773_p11, 1, 0 }
  0x17   : > { %s153_s28 = sshll.u32 %s145_s27, 4  ;;  %s787_s3 = scalar_lea.hbm %s934_s0, %s445_s26  ;;  %s789_s28 = int_to_ptr.vmem [resolvable:$true] %s153_s28 }
  0x18   : > { %p793_p0 = pnand %p491_p13, %p756_p4  ;;  %s446_s5 = sshll.u32 %s780_s25, 2 }
  0x19   : > { %s143_s6 = scalar_lea.sflag [#allocation3], %s780_s25  ;;  %s545_s7 = scalar_lea.hbm %s787_s3, 16 }
  0x1a   : > { %p546_p3 = scmp.ne.s32.totalorder %s787_s3, %s545_s7  ;;  %p547_p5 = pneg %p793_p0 }
  0x1b   : > { %s550_s16 = scalar_lea.hbm %s934_s0, 32  ;;  %p551_p4 = scmp.lt.u32.totalorder %s787_s3, %s934_s0 }
  0x1c   : > { %p548_p6 = pnand %p547_p5, %p546_p3  ;;  %p552_p10 = scmp.lt.u32.totalorder %s550_s16, %s545_s7 }
  0x1d   : > { %p554_p12 = scmp.lt.u32.totalorder %s545_s7, %s787_s3 }
  0x1e   : > { %p549_p7 = pneg %p548_p6  ;;  %p553_p13 = por %p552_p10, %p551_p4 }
  0x20   : > { %p555_p1 = por %p554_p12, %p553_p13 }
  0x22   : > { %p556_p2 = pnand %p555_p1, %p549_p7 }
  0x24   : > { %559 = shalt.err (!%p556_p2)
}
  0x25   : > { %s560_s20 = scalar_lea.vmem %s789_s28, 16  ;;  %s693_s26 = smov [#allocation2]  }
  0x26   : > { %p561_p3 = scmp.ne.s32.totalorder %s789_s28, %s560_s20  ;;  %s565_s27 = sshll.u32 %s693_s26, 4  ;;  %s566_s27 = int_to_ptr.vmem [resolvable:$false] %s565_s27 }
  0x27   : > { %s567_s29 = scalar_lea.vmem %s566_s27, 32  ;;  %p568_p9 = scmp.lt.s32.totalorder %s789_s28, %s566_s27 }
  0x28   : > { %p563_p6 = pnand %p561_p3, %p547_p5  ;;  %p569_p4 = scmp.lt.s32.totalorder %s567_s29, %s560_s20 }
  0x2a   : > { %p564_p11 = pneg %p563_p6  ;;  %p570_p10 = por %p569_p4, %p568_p9 }
  0x2c   : > { %p571_p12 = pnand %p570_p10, %p564_p11 }
  0x2e   : > { %574 = shalt.err (!%p571_p12)
}
  0x2f   : > { %483 = dma.hbm_to_vmem [thread:$0]  (!%p793_p0), %s787_s3, 16, %s789_s28, %s143_s6  }
  0x30   : > { %p944_p1 = scmp.lt.s32.totalorder %s691_s14, 3  ;;  %p945_p2 = scmp.ge.s32.totalorder %s691_s14, 1 }
  0x31   : > { %s447_s7 = sshll.u32 %s687_s13, 6  ;;  %s164_s8 = scalar_lea.vmem [#allocation5], %s446_s5 }
  0x32   : > { %p830_p7 = pnand %p945_p2, %p944_p1  ;;  %s172_s15 = sshll.u32 %s164_s8, 4  ;;  %s173_s15 = int_to_ptr.vmem [resolvable:$true] %s172_s15 }
  0x33   : > { %s840_s19 = scalar_lea.hbm %s935_s1, %s447_s7  ;;  %s161_s28 = scalar_lea.sflag [#allocation6], %s780_s25 }
  0x34   : > { %s946_s30 = scalar_select %p830_p7, 1, 0 }
  0x35   : > { %s575_s3 = scalar_lea.hbm %s840_s19, 64  ;;  %s580_s20 = scalar_lea.hbm %s935_s1, 128 }
  0x36   : > { %p576_p9 = scmp.ne.s32.totalorder %s840_s19, %s575_s3  ;;  %p581_p3 = scmp.lt.u32.totalorder %s840_s19, %s935_s1 }
  0x37   : > { %p582_p6 = scmp.lt.u32.totalorder %s580_s20, %s575_s3  ;;  %p584_p10 = scmp.lt.u32.totalorder %s575_s3, %s840_s19 }
  0x38   : > { %p578_p11 = pnand %p576_p9, %p547_p5 }
  0x39   : > { %p583_p4 = por %p582_p6, %p581_p3 }
  0x3a   : > { %p579_p13 = pneg %p578_p11 }
  0x3b   : > { %p585_p12 = por %p584_p10, %p583_p4 }
  0x3d   : > { %p586_p1 = pnand %p585_p12, %p579_p13 }
  0x3f   : > { %589 = shalt.err (!%p586_p1)
}
  0x40   : > { %s590_s25 = scalar_lea.vmem %s173_s15, 64  ;;  %s694_s29 = smov [#allocation5]  }
  0x41   : > { %p591_p2 = scmp.ne.s32.totalorder %s173_s15, %s590_s25  ;;  %s595_s7 = sshll.u32 %s694_s29, 4  ;;  %s596_s7 = int_to_ptr.vmem [resolvable:$false] %s595_s7 }
  0x42   : > { %s597_s8 = scalar_lea.vmem %s596_s7, 128  ;;  %p598_p8 = scmp.lt.s32.totalorder %s173_s15, %s596_s7 }
  0x43   : > { %p593_p9 = pnand %p591_p2, %p547_p5  ;;  %p599_p7 = scmp.lt.s32.totalorder %s597_s8, %s590_s25 }
  0x45   : > { %p594_p11 = pneg %p593_p9  ;;  %p600_p3 = por %p599_p7, %p598_p8 }
  0x47   : > { %p601_p6 = pnand %p600_p3, %p594_p11 }
  0x49   : > { %604 = shalt.err (!%p601_p6)
}
  0x4a   : > { %486 = dma.hbm_to_vmem [thread:$0]  (!%p793_p0), %s840_s19, 64, %s173_s15, %s161_s28  }
  0x4b   : > { %p947_p13 = scmp.ne.s32.totalorder %s946_s30, 0 }
  0x4c   : > { %s865_s16 = sand.u32 (!%p947_p13), 1, %s675_s10   ;;  %p948_p5 = scmp.ne.s32.totalorder (!%p947_p13), %s940_s21, 0 }
  0x4d   : > { %181 = sbr.rel (%p947_p13) target bundleno = 327 (0x147), region = 28  ;;  %s184_s18 = scalar_lea.sflag (!%p947_p13), [#allocation3], %s865_s16 }
  0x4e   : > { %s186_s3 = scalar_lea.vmem (!%p947_p13), [#allocation2], %s865_s16 }
  0x54   : > { %658 = dma.done.wait (%p948_p5), %s184_s18, 16  }
  0x55   : > { %660 = vsyncadd (%p948_p5), %s184_s18, 4294967280  ;;  %s449_s4 = sshll.u32 %s865_s16, 2  ;;  %s192_s15 = scalar_lea.sflag [#allocation6], %s865_s16 }
  0x56   : > { %s195_s30 = scalar_lea.vmem [#allocation5], %s449_s4 }
  0x57   : > { %662 = dma.done.wait (%p948_p5), %s192_s15, 64  }
  0x58   : > { %664 = vsyncadd (%p948_p5), %s192_s15, 4294967232  ;;  %v230_v0 = vlaneseq  ;;  %vm224_vm0 = vcmask 60416   ;;  %v695_v1 = vmov 0.0|0.0   ;;  %s219_s19 = scalar_lea.vmem [#allocation7], %s449_s4  ;;  %v696_v3 = vmov 0.0   ;;  %s458_s21 = sshll.u32 %s683_s12, 6 }
  0x59   : > { %471 = vmatprep.subr.bf16.mxu0 %v695_v1  ;;  %225 = vst.msk [vmem:[%s219_s19] sm:$0xf] %vm224_vm0, %v696_v3  ;;  %vm697_vm1 = vmmov 0   ;;  %v451_v5 = vld [vmem:[%s186_s3] ss:$0 sm:$0xff]  ;;  %vm245_vm5 = vcmask 130048   ;;  %s884_s20 = scalar_lea.hbm %s936_s2, %s458_s21 }
  0x5a   : > { %v231_v2 = vshrl.u32 %v230_v0, 7  ;;  %468 = vmatprep.mubr.msk.f32.mxu0 %vm697_vm1, %v696_v3  ;;  %v698_v6 = vmov 1.0|1.0   ;;  %v243_v7 = vld [vmem:[%s195_s30] sm:$0xf]  ;;  %s337_s28 = sshll.u32 %s219_s19, 4  ;;  %s886_s28 = int_to_ptr.vmem [resolvable:$true] %s337_s28 }
  0x5b   : > { %s323_s26 = scalar_lea.sflag [#allocation4], %s865_s16  ;;  %s605_s27 = scalar_lea.vmem %s886_s28, 64 }
  0x5c   : > { %v232_v4 = vadd.s32 8, %v231_v2  ;;  %vm237_vm2 = vcmp.eq.s32.totalorder %v231_v2, %v451_v5  ;;  %p606_p8 = scmp.ne.s32.totalorder %s886_s28, %s605_s27  ;;  %p949_p0 = scmp.ne.s32.totalorder %s941_s22, 0 }
  0x5d   : > { %s699_s12 = smov [#allocation7]  }
  0x5e   : > { %vm238_vm3 = vcmp.eq.s32.totalorder %v232_v4, %v451_v5  ;;  %p607_p7 = pnand %p606_p8, %p949_p0  ;;  %s609_s25 = sshll.u32 %s699_s12, 4  ;;  %s610_s25 = int_to_ptr.vmem [resolvable:$false] %s609_s25 }
  0x5f   : > { %vm472_vm4 = vmpackc.low %vm238_vm3, %vm237_vm2  ;;  %s611_s29 = scalar_lea.vmem %s610_s25, 128  ;;  %p612_p10 = scmp.lt.s32.totalorder %s886_s28, %s610_s25 }
  0x60   : > { %473 = vmatpush3.bf16.msk.msra.mxu0 %vm472_vm4, %v698_v6  ;;  %v244_v8 = vld [vmem:[%s219_s19] sm:$0xf]  ;;  %p608_p4 = pneg %p607_p7  ;;  %p613_p12 = scmp.lt.s32.totalorder %s611_s29, %s605_s27 }
  0x62   : > { %p614_p1 = por %p613_p12, %p612_p10 }
  0x63   : > { %469 = vmatmul.mubr.msk.f32.vlgmr.msra.gmra.mrb[0].mxu0 %vm245_vm5, %v243_v7 }
  0x64   : > { %p615_p2 = pnand %p614_p1, %p608_p4 }
 0x136   : > { %v315_v9 = vpop.f32.mrb[0].mxu0 }
 0x137   : > { %v319_v10 = vadd.f32 %v315_v9, %v244_v8  ;;  %v470_v11 = vpop.f32.mrb[1].mxu0 }
 0x139   : > { %321 = vst.msk [vmem:[%s219_s19] sm:$0xf] %vm224_vm0, %v319_v10 }
 0x13a   : > { %618 = shalt.err (!%p615_p2)
}
 0x13b   : > { %s619_s7 = scalar_lea.hbm %s884_s20, 64  ;;  %s623_s18 = scalar_lea.hbm %s936_s2, 128 }
 0x13c   : > { %p620_p9 = scmp.ne.s32.totalorder %s884_s20, %s619_s7  ;;  %p624_p6 = scmp.lt.u32.totalorder %s884_s20, %s936_s2 }
 0x13d   : > { %p625_p13 = scmp.lt.u32.totalorder %s623_s18, %s619_s7  ;;  %p627_p8 = scmp.lt.u32.totalorder %s619_s7, %s884_s20 }
 0x13e   : > { %p621_p11 = pnand %p620_p9, %p949_p0 }
 0x13f   : > { %p626_p5 = por %p625_p13, %p624_p6 }
 0x140   : > { %p622_p3 = pneg %p621_p11 }
 0x141   : > { %p628_p7 = por %p627_p8, %p626_p5 }
 0x143   : > { %p629_p4 = pnand %p628_p7, %p622_p3 }
 0x145   : > { %632 = shalt.err (!%p629_p4)
}
 0x146   : > { %478 = dma.vmem_to_hbm [thread:$0]  (%p949_p0), %s886_s28, 64, %s884_s20, %s323_s26  }
 0x147 PF: > { %s349_s15 = sand.u32 1, %s671_s9   ;;  %p950_p10 = scmp.ne.s32.totalorder %s942_s24, 0 }
 0x148   : > { %p951_p12 = scmp.ge.s32.totalorder %s691_s14, 2  ;;  %s350_s30 = scalar_lea.sflag [#allocation4], %s349_s15 }
 0x14a   : > { %p488_p1 = pnand %p951_p12, %p950_p10 }
 0x14c   : > { %666 = dma.done.wait (!%p488_p1), %s350_s30, 64  }
 0x14d   : > { %668 = vsyncadd (!%p488_p1), %s350_s30, 4294967232  ;;  %s21_s14 = sadd.s32 1, %s691_s14   ;;  %s952_s9 = smov %s675_s10 }
 0x14e   : > { %p18_p2 = scmp.ge.s32.totalorder %s21_s14, 4   ;;  %s953_s10 = smov %s679_s11 }
 0x14f   : > { %s954_s11 = smov %s771_s23  ;;  %s955_s12 = smov %s687_s13 }
 0x150   : > { %s956_s13 = smov %s958_s17  ;;  %20 = sbr.rel (!%p18_p2) target bundleno = 8 (0x8), region = 90 }
 0x157   :  { %355 = vsyncpa [#allocation3], 1 }
 0x158   :  { %357 = vsyncpa [#allocation3 + $0x1], 1 }
 0x159   :  { %358 = vsyncpa [#allocation6], 1 }
 0x15a   :  { %360 = vsyncpa [#allocation6 + $0x1], 1 }
 0x15b   :  { %361 = vsyncpa [#allocation4], 1 }
 0x15c   :  { %363 = vsyncpa [#allocation4 + $0x1], 1 }

</bundles_post_ra>
